<compile_context>
chip_gen: v5e
topology: v5e:2x2
jax: 0.10.0
libtpu: 0.0.40
codegen_flags: <defaults>
</compile_context>

<pallas_src>
import jax
import jax.numpy as jnp
from jax.experimental import pallas as pl
from jax.experimental.pallas import tpu as pltpu

_VMEM_LIMIT = 40 * 1024 * 1024  # explicit scoped-VMEM limit (safe on v5e/v6e/v7x)


def _leaky_relu(v):
    # torch.nn.LeakyReLU default negative_slope = 0.01
    return jnp.where(v > 0, v, 0.01 * v)


# --------------------------------------------------------------------------
# Kernel A: layer 1 for a block of pixels as ONE wide matmul.
#   x     : (bs, dim_in)
#   w1cat : (dim_in, P_BLK*H)   columns ordered (pixel, hidden)
#   b1cat : (1, P_BLK*H)        float32
#   out   : (bs, P_BLK*H)       LeakyReLU already applied
# --------------------------------------------------------------------------
def _layer1_kernel(x_ref, w1_ref, b1_ref, o_ref):
    h = jnp.dot(x_ref[...], w1_ref[...], preferred_element_type=jnp.float32)
    h = _leaky_relu(h + b1_ref[...])
    o_ref[...] = h.astype(o_ref.dtype)


# --------------------------------------------------------------------------
# Kernel B: layers 2 + 3 for a block of pixels (pixel-batched layout).
#   h1 : (P_BLK, bs, H)   w2 : (P_BLK, H, H)   b2 : (P_BLK, 1, H)
#   w3 : (P_BLK, 1, H)    b3 : (1, P_BLK)      out: (bs, P_BLK)  lane-dense
# --------------------------------------------------------------------------
def _layer23_kernel(h1_ref, w2_ref, b2_ref, w3_ref, b3_ref, o_ref):
    # Layer 2: batched (bs,H)@(H,H) per pixel on the MXU (batch dim = pixel).
    # The per-pixel loop is generated by the batched dot_general lowering.
    h2 = jnp.einsum('pbh,phk->pbk', h1_ref[...], w2_ref[...],
                    preferred_element_type=jnp.float32)
    h2 = _leaky_relu(h2 + b2_ref[...])
    # Layer 3 (H -> 1) on the VPU/XLU: multiply + reduce over H.  Avoids a
    # degenerate N=1 MXU matmul per pixel.
    y = jnp.sum(h2 * w3_ref[...], axis=-1)              # (P_BLK, bs)
    # Small 2-D transpose so the stored block is lane-dense in pixels.
    o_ref[...] = y.T + b3_ref[...]                       # (bs, P_BLK)


def _choose_pixel_block(num_pixel, dim_in, hidden):
    """Pick the pixel block size (and padded pixel count)."""
    per_pixel_bytes = 4 * (dim_in * hidden + hidden * hidden + 4 * hidden + 2)
    budget = 4 * 1024 * 1024           # per-block weight bytes (x2 double-buffer)
    max_pixels = max(1, budget // per_pixel_bytes)
    if num_pixel <= max_pixels:
        # Single block: block dims equal the full array dims -> always legal.
        return int(num_pixel), int(num_pixel)
    # Multiple blocks: pixel block must be a multiple of 128 so the
    # lane-dense (bs, P_BLK) / (1, P_BLK) output & bias blocks are legal.
    p_blk = int(max(128, min(512, (max_pixels // 128) * 128)))
    p_pad = int(-(-num_pixel // p_blk) * p_blk)
    return p_blk, p_pad


def perceptron_sp_forward(x, params, *, use_bf16=False):
    """Forward pass of PerceptronSP.  x: (bs, dim_in) -> (bs, num_pixel)."""
    w1, b1, w2, b2, w3, b3 = params
    num_pixel, dim_in, hidden = w1.shape
    bs = x.shape[0]

    p_blk, p_pad = _choose_pixel_block(num_pixel, dim_in, hidden)
    n_blk = p_pad // p_blk

    def pad_pixels(a):
        if p_pad == num_pixel:
            return a
        return jnp.pad(a, [(0, p_pad - num_pixel)] + [(0, 0)] * (a.ndim - 1))

    w1, b1, w2, b2, w3, b3 = (pad_pixels(a) for a in (w1, b1, w2, b2, w3, b3))

    mm_dtype = jnp.bfloat16 if use_bf16 else jnp.float32

    # ---- one-time layout prep (plain XLA ops, outside the kernels) ----
    # Layer-1 weights concatenated across pixels: column index = p*H + h.
    w1cat = jnp.transpose(w1, (1, 0, 2)).reshape(dim_in, p_pad * hidden)
    w1cat = w1cat.astype(mm_dtype)
    b1cat = b1.reshape(1, p_pad * hidden)                 # float32
    w2b = w2.astype(mm_dtype)                             # (P, H, H)
    b2b = b2                                              # (P, 1, H) float32
    w3r = jnp.transpose(w3, (0, 2, 1))                    # (P, 1, H) float32 (VPU path)
    b3r = b3.reshape(1, p_pad)                            # (1, P)    float32
    xq = x.astype(mm_dtype)

    nh_blk = p_blk * hidden

    # ---- kernel A: wide layer-1 matmul over pixel blocks ----
    h1_wide = pl.pallas_call(
        _layer1_kernel,
        out_shape=jax.ShapeDtypeStruct((bs, p_pad * hidden), mm_dtype),
        grid_spec=pltpu.PrefetchScalarGridSpec(
            num_scalar_prefetch=0,
            grid=(n_blk,),
            in_specs=[
                pl.BlockSpec((bs, dim_in), lambda i: (0, 0)),
                pl.BlockSpec((dim_in, nh_blk), lambda i: (0, i)),
                pl.BlockSpec((1, nh_blk), lambda i: (0, i)),
            ],
            out_specs=pl.BlockSpec((bs, nh_blk), lambda i: (0, i)),
        ),
        compiler_params=pltpu.CompilerParams(
            dimension_semantics=("parallel",),
            vmem_limit_bytes=_VMEM_LIMIT),
    )(xq, w1cat, b1cat)

    # Re-layout h1 to pixel-batched form for layers 2-3.  Done by XLA; traffic
    # is bs*P*H elements, a few percent of the per-pixel weight traffic.
    h1p = h1_wide.reshape(bs, p_pad, hidden).transpose(1, 0, 2)   # (P, bs, H)

    # ---- kernel B: layers 2-3 over pixel blocks, lane-dense output ----
    out = pl.pallas_call(
        _layer23_kernel,
        out_shape=jax.ShapeDtypeStruct((bs, p_pad), jnp.float32),
        grid_spec=pltpu.PrefetchScalarGridSpec(
            num_scalar_prefetch=0,
            grid=(n_blk,),
            in_specs=[
                pl.BlockSpec((p_blk, bs, hidden), lambda i: (i, 0, 0)),
                pl.BlockSpec((p_blk, hidden, hidden), lambda i: (i, 0, 0)),
                pl.BlockSpec((p_blk, 1, hidden), lambda i: (i, 0, 0)),
                pl.BlockSpec((p_blk, 1, hidden), lambda i: (i, 0, 0)),
                pl.BlockSpec((1, p_blk), lambda i: (0, i)),
            ],
            out_specs=pl.BlockSpec((bs, p_blk), lambda i: (0, i)),
        ),
        compiler_params=pltpu.CompilerParams(
            dimension_semantics=("parallel",),
            vmem_limit_bytes=_VMEM_LIMIT),
    )(h1p, w2b, b2b, w3r, b3r)

    return out[:, :num_pixel]                              # (bs, num_pixel)


def init_params(key, dim_in, num_neurons, num_pixel):
    """Deterministic per-pixel MLP parameters (torch-style uniform fan-in init).

    Weights are stored as (pixel, in, out), i.e. transposed vs torch's (out, in),
    so the kernels compute x @ W + b.
    """
    ks = jax.random.split(key, 6)

    def u(k, shape, fan_in):
        bound = 1.0 / jnp.sqrt(jnp.float32(fan_in))
        return jax.random.uniform(k, shape, jnp.float32, -bound, bound)

    w1 = u(ks[0], (num_pixel, dim_in, num_neurons), dim_in)
    b1 = u(ks[1], (num_pixel, 1, num_neurons), dim_in)
    w2 = u(ks[2], (num_pixel, num_neurons, num_neurons), num_neurons)
    b2 = u(ks[3], (num_pixel, 1, num_neurons), num_neurons)
    w3 = u(ks[4], (num_pixel, num_neurons, 1), num_neurons)
    b3 = u(ks[5], (num_pixel, 1, 1), num_neurons)
    return (w1, b1, w2, b2, w3, b3)


def reference_forward(x, params):
    """Pure-jnp reference replicating the PyTorch forward."""
    w1, b1, w2, b2, w3, b3 = params
    h1 = _leaky_relu(jnp.einsum('bd,pdh->pbh', x, w1) + b1)
    h2 = _leaky_relu(jnp.einsum('pbh,phk->pbk', h1, w2) + b2)
    # final Linear(H -> 1), written as an explicit multiply + reduce
    y = jnp.sum(h2 * jnp.transpose(w3, (0, 2, 1)), axis=-1) + b3[:, :, 0]  # (P, bs)
    return y.T                                                              # (bs, P)


if __name__ == "__main__":
    dim_in, num_neurons, num_pixel = 32, 32, 8
    bs = 2

    key = jax.random.PRNGKey(0)
    k_x, k_p = jax.random.split(key)

    x = jax.random.normal(k_x, (bs, dim_in), jnp.float32)
    params = init_params(k_p, dim_in, num_neurons, num_pixel)

    y_ref = reference_forward(x, params)

    # f32 path (default): parity with the fp32 torch module.
    y = jax.block_until_ready(perceptron_sp_forward(x, params))
    assert y.shape == (bs, num_pixel)
    assert jnp.allclose(y, y_ref, atol=1e-4, rtol=1e-4), (
        float(jnp.max(jnp.abs(y - y_ref))))

    # bf16 storage path (v6e/v7x bandwidth optimization): f32 accumulation,
    # looser tolerance vs the fp32 reference.
    y_bf16 = jax.block_until_ready(perceptron_sp_forward(x, params, use_bf16=True))
    assert y_bf16.shape == (bs, num_pixel)
    assert jnp.allclose(y_bf16, y_ref, atol=3e-2, rtol=3e-2), (
        float(jnp.max(jnp.abs(y_bf16 - y_ref))))

    print("KERNEL_OK")
</pallas_src>

<mosaic_0001>
module attributes {stable_mosaic.version = 11 : i64} {
  func.func @_layer1_kernel(%arg0: i32, %arg1: memref<2x32xf32, #tpu.memory_space<vmem>>, %arg2: memref<32x256xf32, #tpu.memory_space<vmem>>, %arg3: memref<1x256xf32, #tpu.memory_space<vmem>>, %arg4: memref<2x256xf32, #tpu.memory_space<vmem>>) attributes {dimension_semantics = [#tpu.dimension_semantics<parallel>], iteration_bounds = array<i64: 1>, scalar_prefetch = 0 : i64, scratch_operands = 0 : i64, tpu.core_type = #tpu.core_type<tc>, window_params = [{pipeline_mode = #tpu.pipeline_mode<synchronous>, transform_indices = @transform_0, window_bounds = array<i64: 2, 32>}, {transform_indices = @transform_1, window_bounds = array<i64: 32, 256>}, {transform_indices = @transform_2, window_bounds = array<i64: 1, 256>}, {transform_indices = @transform_3, window_bounds = array<i64: 2, 256>}]} {
    %c0 = arith.constant 0 : index
    %c0_0 = arith.constant 0 : index
    %0 = vector.load %arg1[%c0, %c0_0] : memref<2x32xf32, #tpu.memory_space<vmem>>, vector<2x32xf32>
    %c0_1 = arith.constant 0 : index
    %c0_2 = arith.constant 0 : index
    %1 = vector.load %arg2[%c0_1, %c0_2] : memref<32x256xf32, #tpu.memory_space<vmem>>, vector<32x256xf32>
    %cst = arith.constant dense<0.000000e+00> : vector<2x256xf32>
    %2 = tpu.matmul %0, %1, %cst {dimension_numbers = #tpu.dot_dimension_numbers<[1], [0], [0], [1], [0, 0, 1, 1], [], []>} : vector<2x32xf32>, vector<32x256xf32>, vector<2x256xf32> -> vector<2x256xf32>
    %c0_3 = arith.constant 0 : index
    %c0_4 = arith.constant 0 : index
    %3 = vector.load %arg3[%c0_3, %c0_4] : memref<1x256xf32, #tpu.memory_space<vmem>>, vector<1x256xf32>
    %4 = vector.broadcast %3 : vector<1x256xf32> to vector<2x256xf32>
    %5 = arith.addf %2, %4 : vector<2x256xf32>
    %cst_5 = arith.constant 0.000000e+00 : f32
    %6 = vector.broadcast %cst_5 : f32 to vector<2x256xf32>
    %7 = arith.cmpf ogt, %5, %6 : vector<2x256xf32>
    %cst_6 = arith.constant 0.00999999977 : f32
    %8 = vector.broadcast %cst_6 : f32 to vector<2x256xf32>
    %9 = arith.mulf %8, %5 : vector<2x256xf32>
    %10 = arith.select %7, %5, %9 : vector<2x256xi1>, vector<2x256xf32>
    %c0_7 = arith.constant 0 : index
    %c0_8 = arith.constant 0 : index
    %11 = vector.load %arg4[%c0_7, %c0_8] : memref<2x256xf32, #tpu.memory_space<vmem>>, vector<2x256xf32>
    tpu.vector_store %arg4[%c0_7, %c0_8], %10 {strides = array<i32>} : memref<2x256xf32, #tpu.memory_space<vmem>>, vector<2x256xf32>,
    return
  }
  func.func @transform_0(%arg0: i32) -> (i32, i32) {
    %c0_i32 = arith.constant 0 : i32
    %c0_i32_0 = arith.constant 0 : i32
    %c0_i32_1 = arith.constant 0 : i32
    return %c0_i32, %c0_i32_0 : i32, i32
  }
  func.func @transform_1(%arg0: i32) -> (i32, i32) {
    %c0_i32 = arith.constant 0 : i32
    %c0_i32_0 = arith.constant 0 : i32
    return %c0_i32, %arg0 : i32, i32
  }
  func.func @transform_2(%arg0: i32) -> (i32, i32) {
    %c0_i32 = arith.constant 0 : i32
    %c0_i32_0 = arith.constant 0 : i32
    return %c0_i32, %arg0 : i32, i32
  }
  func.func @transform_3(%arg0: i32) -> (i32, i32) {
    %c0_i32 = arith.constant 0 : i32
    %c0_i32_0 = arith.constant 0 : i32
    return %c0_i32, %arg0 : i32, i32
  }
}

</mosaic_0001>

<bundles_post_ra>
// kernel: tpu_custom_call.1
= control target key start
LH: loop header
LB: loop body
LE: loop exit
PB: predicated region body
PF: predicated region fallthrough
CT: control target
= control target key end

     0   :  { %8 = vsyncpa [#allocation3], 0  ;;  %s296_s0 = inlined_call_operand.hbm [shape: f32[2,32], index: 0, kind: input, shape index: {}]   ;;  %s297_s1 = inlined_call_operand.hbm [shape: f32[32,256], index: 1, kind: input, shape index: {}]   ;;  %s298_s2 = inlined_call_operand.hbm [shape: f32[1,256], index: 2, kind: input, shape index: {}]   ;;  %s299_s3 = inlined_call_operand.hbm [shape: f32[2,256], index: 3, kind: output, shape index: {}]  }
   0x1   :  { %9 = vsyncpa [#allocation6], 0  ;;  %s26_s14 = sshll.u32 %s297_s1, 4  ;;  %s27_s14 = int_to_ptr.hbm [resolvable:$true] %s26_s14 }
   0x2   :  { %10 = vsyncpa [#allocation4], 0  ;;  %s258_s15 = smov [#allocation5]   ;;  %s16_s19 = sshll.u32 %s296_s0, 4  ;;  %s17_s19 = int_to_ptr.hbm [resolvable:$true] %s16_s19 }
   0x3   :  { %s28_s16 = sshll.u32 %s258_s15, 4  ;;  %s259_s20 = smov 256   ;;  %s29_s16 = int_to_ptr.vmem [resolvable:$true] %s28_s16 }
   0x4   :  { %s260_s21 = smov 16   ;;  %s261_s22 = smov [#allocation2]  }
   0x5   :  { %34 = dma.hbm_to_vmem [thread:$0]  %s27_s14, 1024, %s29_s16, [#allocation6], %s259_s20, %s259_s20, %s260_s21  }
   0x6   :  { %s18_s23 = sshll.u32 %s261_s22, 4  ;;  %s40_s26 = sshll.u32 %s298_s2, 4  ;;  %s19_s23 = int_to_ptr.vmem [resolvable:$true] %s18_s23  ;;  %s41_s26 = int_to_ptr.hbm [resolvable:$true] %s40_s26 }
   0x7   :  { %21 = dma.hbm_to_vmem [thread:$0]  %s17_s19, 32, %s19_s23, [#allocation3]  }
   0x8   :  { %s262_s1 = smov [#allocation7]  }
   0x9   :  { %s42_s27 = sshll.u32 %s262_s1, 4  ;;  %s43_s27 = int_to_ptr.vmem [resolvable:$true] %s42_s27 }
   0xa   :  { %45 = dma.hbm_to_vmem [thread:$0]  %s41_s26, 32, %s43_s27, [#allocation6]  }
   0xb   :  { %252 = dma.done.wait [#allocation3], 32  }
   0xc   :  { %253 = vsyncadd [#allocation3], 4294967264 }
   0xd   :  { %254 = dma.done.wait [#allocation6], 1056  }
   0xe   :  { %255 = vsyncadd [#allocation6], 4294966240  ;;  %v65_v0 = vld [vmem:[#allocation5 + $0x30] sm:$0xff]  ;;  %v66_v1 = vld [vmem:[#allocation5 + $0x38] sm:$0xff]  ;;  %vm73_vm0 = vcmask 261120   ;;  %s263_s0 = smov [#allocation8]  }
   0xf   :  { %v63_v2 = vld [vmem:[#allocation5 + $0x20] sm:$0xff]  ;;  %89 = vmatpush.msra.mxu0 %v65_v0  ;;  %109 = vmatpush.msra.mxu1 %v66_v1  ;;  %v64_v3 = vld [vmem:[#allocation5 + $0x28] sm:$0xff]  ;;  %v61_v4 = vld [vmem:[#allocation5 + $0x10] sm:$0xff]  ;;  %s135_s2 = sshll.u32 %s263_s0, 4  ;;  %s137_s30 = sshll.u32 %s299_s3, 4  ;;  %vm126_vm3 = vcmask 1041408   ;;  %s136_s2 = int_to_ptr.vmem [resolvable:$true] %s135_s2  ;;  %s138_s30 = int_to_ptr.hbm [resolvable:$true] %s137_s30 }
  0x10   :  { %v62_v5 = vld [vmem:[#allocation5 + $0x18] sm:$0xff]  ;;  %v59_v6 = vld [vmem:[#allocation5] sm:$0xff]  ;;  %v60_v7 = vld [vmem:[#allocation5 + $0x8] sm:$0xff] }
  0x11   :  { %90 = vmatpush.msra.mxu0 %v63_v2  ;;  %110 = vmatpush.msra.mxu1 %v64_v3  ;;  %v58_v8 = vld [vmem:[#allocation2] sm:$0x3]  ;;  %v67_v9 = vld [vmem:[#allocation7] sm:$0x3] }
  0x12   :  { %v69_v10 = vperm.slane %v67_v9, 0  ;;  %v70_v11 = vperm.slane %v67_v9, 1 }
  0x13   :  { %91 = vmatpush.msra.mxu0 %v61_v4  ;;  %111 = vmatpush.msra.mxu1 %v62_v5 }
  0x15   :  { %92 = vmatpush.msra.mxu0 %v59_v6  ;;  %112 = vmatpush.msra.mxu1 %v60_v7 }
  0x16   :  { %148 = vmatmul.msk.f32.vlgmr.msra.gmra.mxu0 %vm73_vm0, %v58_v8  ;;  %149 = vmatmul.msk.f32.vlgmr.msra.gmra.mxu1 %vm73_vm0, %v58_v8 }
  0x93   :  { %v94_v12 = vpop.f32.mrf.mxu0  ;;  %v114_v13 = vpop.f32.mrf.mxu1 }
  0x94   :  { %v95_v14 = vadd.f32 %v94_v12, %v69_v10  ;;  %v115_v15 = vadd.f32 %v114_v13, %v70_v11 }
  0x96   :  { %v119_v16 = vmul.f32 0.01, %v95_v14  ;;  %vm118_vm1 = vcmp.gt.f32.partialorder %v115_v15, 0.0  ;;  %v120_v17 = vmul.f32 0.01, %v115_v15  ;;  %vm117_vm2 = vcmp.gt.f32.partialorder %v95_v14, 0.0 }
  0x98   :  { %v122_v18 = vsel %vm118_vm1, %v115_v15, %v120_v17  ;;  %v121_v20 = vsel %vm117_vm2, %v95_v14, %v119_v16 }
  0x99   :  { %v125_v19 = vrot.slane %v122_v18, 6 }
  0x9b   :  { %v127_v21 = vsel %vm126_vm3, %v121_v20, %v125_v19 }
  0x9c   :  { %129 = vst [vmem:[#allocation8] sm:$0xf] %v127_v21 }
  0x9d   :  { %140 = dma.vmem_to_hbm [thread:$0]  %s136_s2, 64, %s138_s30, [#allocation4]  }
  0x9e   :  { %256 = dma.done.wait [#allocation4], 64  }
  0x9f   :  { %257 = vsyncadd [#allocation4], 4294967232 }
  0xa0   :  { %145 = vsyncpa [#allocation3], 1 }
  0xa1   :  { %146 = vsyncpa [#allocation6], 1 }
  0xa2   :  { %147 = vsyncpa [#allocation4], 1 }

</bundles_post_ra>
